<compile_context>
chip_gen: v6e
topology: v6e:2x2x1
jax: 0.10.0
libtpu: 0.0.40
codegen_flags: <defaults>
</compile_context>

<pallas_src>
import jax
import jax.numpy as jnp
from jax.experimental import pallas as pl
from jax.experimental.pallas import tpu as pltpu


def _round_up(v, m):
    return -(-v // m) * m


def _make_kernel(c, h, w, tb, compute_dtype, unroll):
    def kernel(shift_ref, x_ref, rbank_ref, cbank_ref, o_ref):
        g = pl.program_id(0)

        def body(t, carry):
            img = g * tb + t
            sx = shift_ref[2 * img]        # width  (x) shift in [0, 2*pad]
            sy = shift_ref[2 * img + 1]    # height (y) shift in [0, 2*pad]
            R = rbank_ref[sy]              # (h, h) one-hot row selector
            Ct = cbank_ref[sx]             # (w, w) one-hot column selector (pre-transposed)
            for ci in range(c):            # c*h*h*w + c*h*w*w MACs total: no c^2 waste
                xc = x_ref[t, ci].astype(compute_dtype)                     # (h, w)
                xr = jnp.dot(R, xc, preferred_element_type=jnp.float32)     # row shift
                y = jnp.dot(xr.astype(compute_dtype), Ct,
                            preferred_element_type=jnp.float32)             # column shift
                o_ref[t, ci] = y.astype(o_ref.dtype)
            return carry

        jax.lax.fori_loop(0, tb, body, 0, unroll=unroll)

    return kernel


def _pick_batch_tile(n, c, h, w, itemsize, bank_vmem_bytes, *,
                     target_block_bytes=4 << 20, max_tb=64, vmem_budget=24 << 20):
    """Batch-tile size + explicit VMEM limit.

    Targets >= target_block_bytes of payload per in/out buffer (amortizes the ~0.35 us
    per-grid-step overhead, issues large DMAs) while keeping
        2x(in) + 2x(out) blocks + selector banks + intermediates
    inside a budget that is safe on v5e (16 MiB scoped default, raised explicitly),
    v6e (32 MiB default) and v7x (64 MiB physical).
    """
    img_hbm = c * h * w * itemsize
    # VMEM footprint uses the (8, 128)-tiled shape of each (h, w) slab.
    slab = _round_up(h, 8) * _round_up(w, 128)
    img_vmem = c * slab * itemsize
    interm = 6 * slab * 4 + (_round_up(h, 8) * _round_up(h, 128)
                             + _round_up(w, 8) * _round_up(w, 128)) * 4
    overhead = 2 * bank_vmem_bytes + interm + (1 << 20)          # +1 MiB slack
    desired = max(1, target_block_bytes // max(1, img_hbm))
    cap = max(1, (vmem_budget - overhead) // max(1, 4 * img_vmem))
    tb = int(max(1, min(n, max_tb, desired, cap)))
    need = 4 * tb * img_vmem + overhead
    vmem_limit = int(min(32 << 20, max(need + (2 << 20), 16 << 20)))
    return tb, vmem_limit


def random_shifts_aug(x, key, pad=4):
    """JAX/Pallas equivalent of RandomShiftsAug(pad).forward(x). x is NCHW."""
    n, c, h, w = x.shape
    assert h == w

    # One integer (sx, sy) pair per image, uniform in [0, 2*pad].
    shifts = jax.random.randint(key, (n, 2), 0, 2 * pad + 1, dtype=jnp.int32)

    compute_dtype = jnp.bfloat16 if x.dtype == jnp.bfloat16 else jnp.float32
    itemsize = jnp.dtype(x.dtype).itemsize
    cdt_size = jnp.dtype(compute_dtype).itemsize
    nshift = 2 * pad + 1

    bank_vmem_bytes = nshift * (_round_up(h, 8) * _round_up(h, 128)
                                + _round_up(w, 8) * _round_up(w, 128)) * cdt_size
    tb, vmem_limit = _pick_batch_tile(n, c, h, w, itemsize, bank_vmem_bytes)
    unroll = int(min(tb, 8))
    num_blocks = int(pl.cdiv(n, tb))
    n_pad = num_blocks * tb

    # Flat, zero-padded shift scalars so the tail grid block never indexes out of range.
    shifts_flat = jnp.zeros((2 * n_pad,), jnp.int32).at[:2 * n].set(shifts.reshape(-1))

    # One-hot selector banks, one (h,h) / (w,w) selector per possible shift value.
    s_range = jnp.arange(nshift, dtype=jnp.int32)
    rows = jnp.arange(h, dtype=jnp.int32)
    src_r = jnp.clip(rows[None, :] + s_range[:, None] - pad, 0, h - 1)        # (2p+1, h)
    rbank = (src_r[:, :, None] == rows[None, None, :]).astype(compute_dtype)  # [s, i, k]
    cols = jnp.arange(w, dtype=jnp.int32)
    src_c = jnp.clip(cols[None, :] + s_range[:, None] - pad, 0, w - 1)        # (2p+1, w)
    cbank = (cols[None, :, None] == src_c[:, None, :]).astype(compute_dtype)  # [s, l, j]

    kernel = _make_kernel(c, h, w, tb, compute_dtype, unroll)

    cost = pl.CostEstimate(
        flops=2 * n * c * (h * h * w + h * w * w),
        transcendentals=0,
        bytes_accessed=2 * n * c * h * w * itemsize + 2 * nshift * (h * h + w * w) * cdt_size,
    )

    out = pl.pallas_call(
        kernel,
        out_shape=jax.ShapeDtypeStruct((n, c, h, w), x.dtype),
        grid_spec=pltpu.PrefetchScalarGridSpec(
            num_scalar_prefetch=1,                                  # shifts live in SMEM
            grid=(num_blocks,),
            in_specs=[
                pl.BlockSpec((tb, c, h, w), lambda g, s: (g, 0, 0, 0)),
                pl.BlockSpec((nshift, h, h), lambda g, s: (0, 0, 0)),   # row-selector bank
                pl.BlockSpec((nshift, w, w), lambda g, s: (0, 0, 0)),   # col-selector bank
            ],
            out_specs=pl.BlockSpec((tb, c, h, w), lambda g, s: (g, 0, 0, 0)),
        ),
        compiler_params=pltpu.CompilerParams(
            dimension_semantics=("parallel",),                      # batch has no carry
            vmem_limit_bytes=vmem_limit,
        ),
        cost_estimate=cost,
    )(shifts_flat, x, rbank, cbank)
    return out, shifts


def _reference(x, shifts, pad):
    """Pure-JAX reference: replicate pad then integer crop (== grid_sample result)."""
    n, c, h, w = x.shape
    xp = jnp.pad(x, ((0, 0), (0, 0), (pad, pad), (pad, pad)), mode="edge")

    def one(xb, s):
        return jax.lax.dynamic_slice(xb, (0, s[1], s[0]), (c, h, w))

    return jax.vmap(one)(xp, shifts)


if __name__ == "__main__":
    key = jax.random.PRNGKey(0)
    kx, ks = jax.random.split(key)

    x = jax.random.normal(kx, (2, 4, 16, 16), dtype=jnp.float32)

    out, shifts = random_shifts_aug(x, ks, pad=4)
    out = jax.block_until_ready(out)

    ref = _reference(x, shifts, 4)
    assert out.shape == x.shape and out.dtype == x.dtype
    assert jnp.allclose(out, ref, atol=1e-6), "Pallas kernel mismatch vs reference"

    print("KERNEL_OK")
</pallas_src>

<mosaic_0001>
module attributes {stable_mosaic.version = 11 : i64} {
  func.func @kernel(%arg0: i32, %arg1: memref<4xi32, #tpu.memory_space<smem>>, %arg2: memref<2x4x16x16xf32, #tpu.memory_space<vmem>>, %arg3: memref<9x16x16xf32, #tpu.memory_space<vmem>>, %arg4: memref<9x16x16xf32, #tpu.memory_space<vmem>>, %arg5: memref<2x4x16x16xf32, #tpu.memory_space<vmem>>) attributes {dimension_semantics = [#tpu.dimension_semantics<parallel>], iteration_bounds = array<i64: 1>, scalar_prefetch = 1 : i64, scratch_operands = 0 : i64, tpu.core_type = #tpu.core_type<tc>, window_params = [{transform_indices = @transform_0, window_bounds = array<i64: 2, 4, 16, 16>}, {pipeline_mode = #tpu.pipeline_mode<synchronous>, transform_indices = @transform_1, window_bounds = array<i64: 9, 16, 16>}, {pipeline_mode = #tpu.pipeline_mode<synchronous>, transform_indices = @transform_2, window_bounds = array<i64: 9, 16, 16>}, {transform_indices = @transform_3, window_bounds = array<i64: 2, 4, 16, 16>}]} {
    %c0_i32 = arith.constant 0 : i32
    %c2_i32 = arith.constant 2 : i32
    %0 = arith.muli %arg0, %c2_i32 : i32
    %1 = arith.addi %0, %c0_i32 : i32
    %c2_i32_0 = arith.constant 2 : i32
    %2 = arith.muli %c2_i32_0, %1 : i32
    %3 = arith.index_cast %2 : i32 to index
    %4 = memref.load %arg1[%3] : memref<4xi32, #tpu.memory_space<smem>>
    %c2_i32_1 = arith.constant 2 : i32
    %5 = arith.muli %c2_i32_1, %1 : i32
    %c1_i32 = arith.constant 1 : i32
    %6 = arith.addi %5, %c1_i32 : i32
    %7 = arith.index_cast %6 : i32 to index
    %8 = memref.load %arg1[%7] : memref<4xi32, #tpu.memory_space<smem>>
    %9 = arith.index_cast %8 : i32 to index
    %c0 = arith.constant 0 : index
    %c0_2 = arith.constant 0 : index
    %10 = vector.load %arg3[%9, %c0, %c0_2] : memref<9x16x16xf32, #tpu.memory_space<vmem>>, vector<1x16x16xf32>
    %11 = vector.shape_cast %10 : vector<1x16x16xf32> to vector<16x16xf32>
    %12 = arith.index_cast %4 : i32 to index
    %c0_3 = arith.constant 0 : index
    %c0_4 = arith.constant 0 : index
    %13 = vector.load %arg4[%12, %c0_3, %c0_4] : memref<9x16x16xf32, #tpu.memory_space<vmem>>, vector<1x16x16xf32>
    %14 = vector.shape_cast %13 : vector<1x16x16xf32> to vector<16x16xf32>
    %15 = arith.index_cast %c0_i32 : i32 to index
    %c0_5 = arith.constant 0 : index
    %c0_6 = arith.constant 0 : index
    %c0_7 = arith.constant 0 : index
    %16 = vector.load %arg2[%15, %c0_5, %c0_6, %c0_7] : memref<2x4x16x16xf32, #tpu.memory_space<vmem>>, vector<1x1x16x16xf32>
    %17 = vector.shape_cast %16 : vector<1x1x16x16xf32> to vector<16x16xf32>
    %cst = arith.constant dense<0.000000e+00> : vector<16x16xf32>
    %18 = tpu.matmul %11, %17, %cst {dimension_numbers = #tpu.dot_dimension_numbers<[1], [0], [0], [1], [0, 0, 1, 1], [], []>} : vector<16x16xf32>, vector<16x16xf32>, vector<16x16xf32> -> vector<16x16xf32>
    %cst_8 = arith.constant dense<0.000000e+00> : vector<16x16xf32>
    %19 = tpu.matmul %18, %14, %cst_8 {dimension_numbers = #tpu.dot_dimension_numbers<[1], [0], [0], [1], [0, 0, 1, 1], [], []>} : vector<16x16xf32>, vector<16x16xf32>, vector<16x16xf32> -> vector<16x16xf32>
    %20 = arith.index_cast %c0_i32 : i32 to index
    %c0_9 = arith.constant 0 : index
    %c0_10 = arith.constant 0 : index
    %c0_11 = arith.constant 0 : index
    %21 = vector.load %arg5[%20, %c0_9, %c0_10, %c0_11] : memref<2x4x16x16xf32, #tpu.memory_space<vmem>>, vector<1x1x16x16xf32>
    %22 = vector.shape_cast %21 : vector<1x1x16x16xf32> to vector<16x16xf32>
    %23 = vector.shape_cast %19 : vector<16x16xf32> to vector<1x1x16x16xf32>
    tpu.vector_store %arg5[%20, %c0_9, %c0_10, %c0_11], %23 {strides = array<i32>} : memref<2x4x16x16xf32, #tpu.memory_space<vmem>>, vector<1x1x16x16xf32>,
    %24 = arith.index_cast %c0_i32 : i32 to index
    %c1 = arith.constant 1 : index
    %c0_12 = arith.constant 0 : index
    %c0_13 = arith.constant 0 : index
    %25 = vector.load %arg2[%24, %c1, %c0_12, %c0_13] : memref<2x4x16x16xf32, #tpu.memory_space<vmem>>, vector<1x1x16x16xf32>
    %26 = vector.shape_cast %25 : vector<1x1x16x16xf32> to vector<16x16xf32>
    %cst_14 = arith.constant dense<0.000000e+00> : vector<16x16xf32>
    %27 = tpu.matmul %11, %26, %cst_14 {dimension_numbers = #tpu.dot_dimension_numbers<[1], [0], [0], [1], [0, 0, 1, 1], [], []>} : vector<16x16xf32>, vector<16x16xf32>, vector<16x16xf32> -> vector<16x16xf32>
    %cst_15 = arith.constant dense<0.000000e+00> : vector<16x16xf32>
    %28 = tpu.matmul %27, %14, %cst_15 {dimension_numbers = #tpu.dot_dimension_numbers<[1], [0], [0], [1], [0, 0, 1, 1], [], []>} : vector<16x16xf32>, vector<16x16xf32>, vector<16x16xf32> -> vector<16x16xf32>
    %29 = arith.index_cast %c0_i32 : i32 to index
    %c1_16 = arith.constant 1 : index
    %c0_17 = arith.constant 0 : index
    %c0_18 = arith.constant 0 : index
    %30 = vector.load %arg5[%29, %c1_16, %c0_17, %c0_18] : memref<2x4x16x16xf32, #tpu.memory_space<vmem>>, vector<1x1x16x16xf32>
    %31 = vector.shape_cast %30 : vector<1x1x16x16xf32> to vector<16x16xf32>
    %32 = vector.shape_cast %28 : vector<16x16xf32> to vector<1x1x16x16xf32>
    tpu.vector_store %arg5[%29, %c1_16, %c0_17, %c0_18], %32 {strides = array<i32>} : memref<2x4x16x16xf32, #tpu.memory_space<vmem>>, vector<1x1x16x16xf32>,
    %33 = arith.index_cast %c0_i32 : i32 to index
    %c2 = arith.constant 2 : index
    %c0_19 = arith.constant 0 : index
    %c0_20 = arith.constant 0 : index
    %34 = vector.load %arg2[%33, %c2, %c0_19, %c0_20] : memref<2x4x16x16xf32, #tpu.memory_space<vmem>>, vector<1x1x16x16xf32>
    %35 = vector.shape_cast %34 : vector<1x1x16x16xf32> to vector<16x16xf32>
    %cst_21 = arith.constant dense<0.000000e+00> : vector<16x16xf32>
    %36 = tpu.matmul %11, %35, %cst_21 {dimension_numbers = #tpu.dot_dimension_numbers<[1], [0], [0], [1], [0, 0, 1, 1], [], []>} : vector<16x16xf32>, vector<16x16xf32>, vector<16x16xf32> -> vector<16x16xf32>
    %cst_22 = arith.constant dense<0.000000e+00> : vector<16x16xf32>
    %37 = tpu.matmul %36, %14, %cst_22 {dimension_numbers = #tpu.dot_dimension_numbers<[1], [0], [0], [1], [0, 0, 1, 1], [], []>} : vector<16x16xf32>, vector<16x16xf32>, vector<16x16xf32> -> vector<16x16xf32>
    %38 = arith.index_cast %c0_i32 : i32 to index
    %c2_23 = arith.constant 2 : index
    %c0_24 = arith.constant 0 : index
    %c0_25 = arith.constant 0 : index
    %39 = vector.load %arg5[%38, %c2_23, %c0_24, %c0_25] : memref<2x4x16x16xf32, #tpu.memory_space<vmem>>, vector<1x1x16x16xf32>
    %40 = vector.shape_cast %39 : vector<1x1x16x16xf32> to vector<16x16xf32>
    %41 = vector.shape_cast %37 : vector<16x16xf32> to vector<1x1x16x16xf32>
    tpu.vector_store %arg5[%38, %c2_23, %c0_24, %c0_25], %41 {strides = array<i32>} : memref<2x4x16x16xf32, #tpu.memory_space<vmem>>, vector<1x1x16x16xf32>,
    %42 = arith.index_cast %c0_i32 : i32 to index
    %c3 = arith.constant 3 : index
    %c0_26 = arith.constant 0 : index
    %c0_27 = arith.constant 0 : index
    %43 = vector.load %arg2[%42, %c3, %c0_26, %c0_27] : memref<2x4x16x16xf32, #tpu.memory_space<vmem>>, vector<1x1x16x16xf32>
    %44 = vector.shape_cast %43 : vector<1x1x16x16xf32> to vector<16x16xf32>
    %cst_28 = arith.constant dense<0.000000e+00> : vector<16x16xf32>
    %45 = tpu.matmul %11, %44, %cst_28 {dimension_numbers = #tpu.dot_dimension_numbers<[1], [0], [0], [1], [0, 0, 1, 1], [], []>} : vector<16x16xf32>, vector<16x16xf32>, vector<16x16xf32> -> vector<16x16xf32>
    %cst_29 = arith.constant dense<0.000000e+00> : vector<16x16xf32>
    %46 = tpu.matmul %45, %14, %cst_29 {dimension_numbers = #tpu.dot_dimension_numbers<[1], [0], [0], [1], [0, 0, 1, 1], [], []>} : vector<16x16xf32>, vector<16x16xf32>, vector<16x16xf32> -> vector<16x16xf32>
    %47 = arith.index_cast %c0_i32 : i32 to index
    %c3_30 = arith.constant 3 : index
    %c0_31 = arith.constant 0 : index
    %c0_32 = arith.constant 0 : index
    %48 = vector.load %arg5[%47, %c3_30, %c0_31, %c0_32] : memref<2x4x16x16xf32, #tpu.memory_space<vmem>>, vector<1x1x16x16xf32>
    %49 = vector.shape_cast %48 : vector<1x1x16x16xf32> to vector<16x16xf32>
    %50 = vector.shape_cast %46 : vector<16x16xf32> to vector<1x1x16x16xf32>
    tpu.vector_store %arg5[%47, %c3_30, %c0_31, %c0_32], %50 {strides = array<i32>} : memref<2x4x16x16xf32, #tpu.memory_space<vmem>>, vector<1x1x16x16xf32>,
    %c1_i32_33 = arith.constant 1 : i32
    %c2_i32_34 = arith.constant 2 : i32
    %51 = arith.muli %arg0, %c2_i32_34 : i32
    %52 = arith.addi %51, %c1_i32_33 : i32
    %c2_i32_35 = arith.constant 2 : i32
    %53 = arith.muli %c2_i32_35, %52 : i32
    %54 = arith.index_cast %53 : i32 to index
    %55 = memref.load %arg1[%54] : memref<4xi32, #tpu.memory_space<smem>>
    %c2_i32_36 = arith.constant 2 : i32
    %56 = arith.muli %c2_i32_36, %52 : i32
    %c1_i32_37 = arith.constant 1 : i32
    %57 = arith.addi %56, %c1_i32_37 : i32
    %58 = arith.index_cast %57 : i32 to index
    %59 = memref.load %arg1[%58] : memref<4xi32, #tpu.memory_space<smem>>
    %60 = arith.index_cast %59 : i32 to index
    %c0_38 = arith.constant 0 : index
    %c0_39 = arith.constant 0 : index
    %61 = vector.load %arg3[%60, %c0_38, %c0_39] : memref<9x16x16xf32, #tpu.memory_space<vmem>>, vector<1x16x16xf32>
    %62 = vector.shape_cast %61 : vector<1x16x16xf32> to vector<16x16xf32>
    %63 = arith.index_cast %55 : i32 to index
    %c0_40 = arith.constant 0 : index
    %c0_41 = arith.constant 0 : index
    %64 = vector.load %arg4[%63, %c0_40, %c0_41] : memref<9x16x16xf32, #tpu.memory_space<vmem>>, vector<1x16x16xf32>
    %65 = vector.shape_cast %64 : vector<1x16x16xf32> to vector<16x16xf32>
    %66 = arith.index_cast %c1_i32_33 : i32 to index
    %c0_42 = arith.constant 0 : index
    %c0_43 = arith.constant 0 : index
    %c0_44 = arith.constant 0 : index
    %67 = vector.load %arg2[%66, %c0_42, %c0_43, %c0_44] : memref<2x4x16x16xf32, #tpu.memory_space<vmem>>, vector<1x1x16x16xf32>
    %68 = vector.shape_cast %67 : vector<1x1x16x16xf32> to vector<16x16xf32>
    %cst_45 = arith.constant dense<0.000000e+00> : vector<16x16xf32>
    %69 = tpu.matmul %62, %68, %cst_45 {dimension_numbers = #tpu.dot_dimension_numbers<[1], [0], [0], [1], [0, 0, 1, 1], [], []>} : vector<16x16xf32>, vector<16x16xf32>, vector<16x16xf32> -> vector<16x16xf32>
    %cst_46 = arith.constant dense<0.000000e+00> : vector<16x16xf32>
    %70 = tpu.matmul %69, %65, %cst_46 {dimension_numbers = #tpu.dot_dimension_numbers<[1], [0], [0], [1], [0, 0, 1, 1], [], []>} : vector<16x16xf32>, vector<16x16xf32>, vector<16x16xf32> -> vector<16x16xf32>
    %71 = arith.index_cast %c1_i32_33 : i32 to index
    %c0_47 = arith.constant 0 : index
    %c0_48 = arith.constant 0 : index
    %c0_49 = arith.constant 0 : index
    %72 = vector.load %arg5[%71, %c0_47, %c0_48, %c0_49] : memref<2x4x16x16xf32, #tpu.memory_space<vmem>>, vector<1x1x16x16xf32>
    %73 = vector.shape_cast %72 : vector<1x1x16x16xf32> to vector<16x16xf32>
    %74 = vector.shape_cast %70 : vector<16x16xf32> to vector<1x1x16x16xf32>
    tpu.vector_store %arg5[%71, %c0_47, %c0_48, %c0_49], %74 {strides = array<i32>} : memref<2x4x16x16xf32, #tpu.memory_space<vmem>>, vector<1x1x16x16xf32>,
    %75 = arith.index_cast %c1_i32_33 : i32 to index
    %c1_50 = arith.constant 1 : index
    %c0_51 = arith.constant 0 : index
    %c0_52 = arith.constant 0 : index
    %76 = vector.load %arg2[%75, %c1_50, %c0_51, %c0_52] : memref<2x4x16x16xf32, #tpu.memory_space<vmem>>, vector<1x1x16x16xf32>
    %77 = vector.shape_cast %76 : vector<1x1x16x16xf32> to vector<16x16xf32>
    %cst_53 = arith.constant dense<0.000000e+00> : vector<16x16xf32>
    %78 = tpu.matmul %62, %77, %cst_53 {dimension_numbers = #tpu.dot_dimension_numbers<[1], [0], [0], [1], [0, 0, 1, 1], [], []>} : vector<16x16xf32>, vector<16x16xf32>, vector<16x16xf32> -> vector<16x16xf32>
    %cst_54 = arith.constant dense<0.000000e+00> : vector<16x16xf32>
    %79 = tpu.matmul %78, %65, %cst_54 {dimension_numbers = #tpu.dot_dimension_numbers<[1], [0], [0], [1], [0, 0, 1, 1], [], []>} : vector<16x16xf32>, vector<16x16xf32>, vector<16x16xf32> -> vector<16x16xf32>
    %80 = arith.index_cast %c1_i32_33 : i32 to index
    %c1_55 = arith.constant 1 : index
    %c0_56 = arith.constant 0 : index
    %c0_57 = arith.constant 0 : index
    %81 = vector.load %arg5[%80, %c1_55, %c0_56, %c0_57] : memref<2x4x16x16xf32, #tpu.memory_space<vmem>>, vector<1x1x16x16xf32>
    %82 = vector.shape_cast %81 : vector<1x1x16x16xf32> to vector<16x16xf32>
    %83 = vector.shape_cast %79 : vector<16x16xf32> to vector<1x1x16x16xf32>
    tpu.vector_store %arg5[%80, %c1_55, %c0_56, %c0_57], %83 {strides = array<i32>} : memref<2x4x16x16xf32, #tpu.memory_space<vmem>>, vector<1x1x16x16xf32>,
    %84 = arith.index_cast %c1_i32_33 : i32 to index
    %c2_58 = arith.constant 2 : index
    %c0_59 = arith.constant 0 : index
    %c0_60 = arith.constant 0 : index
    %85 = vector.load %arg2[%84, %c2_58, %c0_59, %c0_60] : memref<2x4x16x16xf32, #tpu.memory_space<vmem>>, vector<1x1x16x16xf32>
    %86 = vector.shape_cast %85 : vector<1x1x16x16xf32> to vector<16x16xf32>
    %cst_61 = arith.constant dense<0.000000e+00> : vector<16x16xf32>
    %87 = tpu.matmul %62, %86, %cst_61 {dimension_numbers = #tpu.dot_dimension_numbers<[1], [0], [0], [1], [0, 0, 1, 1], [], []>} : vector<16x16xf32>, vector<16x16xf32>, vector<16x16xf32> -> vector<16x16xf32>
    %cst_62 = arith.constant dense<0.000000e+00> : vector<16x16xf32>
    %88 = tpu.matmul %87, %65, %cst_62 {dimension_numbers = #tpu.dot_dimension_numbers<[1], [0], [0], [1], [0, 0, 1, 1], [], []>} : vector<16x16xf32>, vector<16x16xf32>, vector<16x16xf32> -> vector<16x16xf32>
    %89 = arith.index_cast %c1_i32_33 : i32 to index
    %c2_63 = arith.constant 2 : index
    %c0_64 = arith.constant 0 : index
    %c0_65 = arith.constant 0 : index
    %90 = vector.load %arg5[%89, %c2_63, %c0_64, %c0_65] : memref<2x4x16x16xf32, #tpu.memory_space<vmem>>, vector<1x1x16x16xf32>
    %91 = vector.shape_cast %90 : vector<1x1x16x16xf32> to vector<16x16xf32>
    %92 = vector.shape_cast %88 : vector<16x16xf32> to vector<1x1x16x16xf32>
    tpu.vector_store %arg5[%89, %c2_63, %c0_64, %c0_65], %92 {strides = array<i32>} : memref<2x4x16x16xf32, #tpu.memory_space<vmem>>, vector<1x1x16x16xf32>,
    %93 = arith.index_cast %c1_i32_33 : i32 to index
    %c3_66 = arith.constant 3 : index
    %c0_67 = arith.constant 0 : index
    %c0_68 = arith.constant 0 : index
    %94 = vector.load %arg2[%93, %c3_66, %c0_67, %c0_68] : memref<2x4x16x16xf32, #tpu.memory_space<vmem>>, vector<1x1x16x16xf32>
    %95 = vector.shape_cast %94 : vector<1x1x16x16xf32> to vector<16x16xf32>
    %cst_69 = arith.constant dense<0.000000e+00> : vector<16x16xf32>
    %96 = tpu.matmul %62, %95, %cst_69 {dimension_numbers = #tpu.dot_dimension_numbers<[1], [0], [0], [1], [0, 0, 1, 1], [], []>} : vector<16x16xf32>, vector<16x16xf32>, vector<16x16xf32> -> vector<16x16xf32>
    %cst_70 = arith.constant dense<0.000000e+00> : vector<16x16xf32>
    %97 = tpu.matmul %96, %65, %cst_70 {dimension_numbers = #tpu.dot_dimension_numbers<[1], [0], [0], [1], [0, 0, 1, 1], [], []>} : vector<16x16xf32>, vector<16x16xf32>, vector<16x16xf32> -> vector<16x16xf32>
    %98 = arith.index_cast %c1_i32_33 : i32 to index
    %c3_71 = arith.constant 3 : index
    %c0_72 = arith.constant 0 : index
    %c0_73 = arith.constant 0 : index
    %99 = vector.load %arg5[%98, %c3_71, %c0_72, %c0_73] : memref<2x4x16x16xf32, #tpu.memory_space<vmem>>, vector<1x1x16x16xf32>
    %100 = vector.shape_cast %99 : vector<1x1x16x16xf32> to vector<16x16xf32>
    %101 = vector.shape_cast %97 : vector<16x16xf32> to vector<1x1x16x16xf32>
    tpu.vector_store %arg5[%98, %c3_71, %c0_72, %c0_73], %101 {strides = array<i32>} : memref<2x4x16x16xf32, #tpu.memory_space<vmem>>, vector<1x1x16x16xf32>,
    %c2_i32_74 = arith.constant 2 : i32
    return
  }
  func.func @transform_0(%arg0: i32, %arg1: memref<4xi32, #tpu.memory_space<smem>>) -> (i32, i32, i32, i32) {
    %c0_i32 = arith.constant 0 : i32
    %c0_i32_0 = arith.constant 0 : i32
    %c0_i32_1 = arith.constant 0 : i32
    %c0_i32_2 = arith.constant 0 : i32
    return %arg0, %c0_i32, %c0_i32_0, %c0_i32_1 : i32, i32, i32, i32
  }
  func.func @transform_1(%arg0: i32, %arg1: memref<4xi32, #tpu.memory_space<smem>>) -> (i32, i32, i32) {
    %c0_i32 = arith.constant 0 : i32
    %c0_i32_0 = arith.constant 0 : i32
    %c0_i32_1 = arith.constant 0 : i32
    %c0_i32_2 = arith.constant 0 : i32
    return %c0_i32, %c0_i32_0, %c0_i32_1 : i32, i32, i32
  }
  func.func @transform_2(%arg0: i32, %arg1: memref<4xi32, #tpu.memory_space<smem>>) -> (i32, i32, i32) {
    %c0_i32 = arith.constant 0 : i32
    %c0_i32_0 = arith.constant 0 : i32
    %c0_i32_1 = arith.constant 0 : i32
    %c0_i32_2 = arith.constant 0 : i32
    return %c0_i32, %c0_i32_0, %c0_i32_1 : i32, i32, i32
  }
  func.func @transform_3(%arg0: i32, %arg1: memref<4xi32, #tpu.memory_space<smem>>) -> (i32, i32, i32, i32) {
    %c0_i32 = arith.constant 0 : i32
    %c0_i32_0 = arith.constant 0 : i32
    %c0_i32_1 = arith.constant 0 : i32
    %c0_i32_2 = arith.constant 0 : i32
    return %arg0, %c0_i32, %c0_i32_0, %c0_i32_1 : i32, i32, i32, i32
  }
}

</mosaic_0001>

<bundles_post_ra>
// kernel: tpu_custom_call.1
= control target key start
LH: loop header
LB: loop body
LE: loop exit
PB: predicated region body
PF: predicated region fallthrough
CT: control target
= control target key end

     0   :  { %s1738_s15 = smov [#allocation3]   ;;  %s1848_s0 = inlined_call_operand.hbm [shape: s32[4], index: 0, kind: input, shape index: {}]   ;;  %s1849_s1 = inlined_call_operand.hbm [shape: f32[2,4,16,16], index: 1, kind: input, shape index: {}]   ;;  %s1850_s2 = inlined_call_operand.hbm [shape: f32[9,16,16], index: 2, kind: input, shape index: {}]   ;;  %s1851_s3 = inlined_call_operand.hbm [shape: f32[9,16,16], index: 3, kind: input, shape index: {}]   ;;  %s1852_s4 = inlined_call_operand.hbm [shape: f32[2,4,16,16], index: 4, kind: output, shape index: {}]  }
   0x1   :  { %10 = dma.hbm_to_smem %s1848_s0, 16, %s1738_s15, [#allocation2] }
   0x2   :  { %1730 = dma.done.wait [#allocation2], 16 }
   0x3   :  { %1731 = vsyncadd [#allocation2], 4294967280 }
   0x4   :  { %12 = sfence }
   0x5   :  { %13 = vsyncpa [#allocation5], 0 }
   0x6   :  { %14 = vsyncpa [#allocation8], 0 }
   0x7   :  { %15 = vsyncpa [#allocation6], 0  ;;  %s1739_s18 = smov [#allocation7]   ;;  %s1740_s20 = smov [#allocation4]  }
   0x8   :  { %s33_s19 = sshll.u32 %s1739_s18, 4  ;;  %s21_s21 = sshll.u32 %s1740_s20, 4  ;;  %s34_s19 = int_to_ptr.vmem [resolvable:$true] %s33_s19  ;;  %s22_s21 = int_to_ptr.vmem [resolvable:$true] %s21_s21 }
   0x9   :  { %s1658_s22 = scalar_lea.vmem %s34_s19, 2304  ;;  %p1663_p1 = scmp.lt.s32.totalorder %s34_s19, %s34_s19 }
   0xa   :  { %p1659_p0 = scmp.ne.s32.totalorder %s34_s19, %s1658_s22  ;;  %p1664_p2 = scmp.lt.s32.totalorder %s1658_s22, %s1658_s22 }
   0xc   :  { %p1665_p3 = por %p1664_p2, %p1663_p1 }
   0xe   :  { %p1666_p4 = pnand %p1665_p3, %p1659_p0 }
  0x10   :  { %1669 = shalt.err (!%p1666_p4)
}
  0x11   :  { %s1741_s0 = smov 128   ;;  %s1742_s23 = smov 8  }
  0x12   :  { %39 = dma.hbm_to_vmem [thread:$0]  %s1850_s2, 2304, %s34_s19, [#allocation8], %s1741_s0, %s1741_s0, %s1742_s23  }
  0x13   :  { %s1678_s26 = scalar_lea.vmem %s22_s21, 2048  ;;  %p1683_p6 = scmp.lt.s32.totalorder %s22_s21, %s22_s21 }
  0x14   :  { %p1679_p5 = scmp.ne.s32.totalorder %s22_s21, %s1678_s26  ;;  %p1684_p7 = scmp.lt.s32.totalorder %s1678_s26, %s1678_s26 }
  0x16   :  { %p1685_p8 = por %p1684_p7, %p1683_p6 }
  0x18   :  { %p1686_p9 = pnand %p1685_p8, %p1679_p5 }
  0x1a   :  { %1689 = shalt.err (!%p1686_p9)
}
  0x1b   :  { %27 = dma.hbm_to_vmem [thread:$0]  %s1849_s1, 2048, %s22_s21, [#allocation5], %s1741_s0, %s1741_s0, %s1742_s23  }
  0x1c   :  { %s1743_s29 = smov [#allocation9]  }
  0x1d   :  { %s45_s30 = sshll.u32 %s1743_s29, 4  ;;  %s46_s30 = int_to_ptr.vmem [resolvable:$true] %s45_s30 }
  0x1e   :  { %s1698_s5 = scalar_lea.vmem %s46_s30, 2304  ;;  %p1703_p11 = scmp.lt.s32.totalorder %s46_s30, %s46_s30 }
  0x1f   :  { %p1699_p10 = scmp.ne.s32.totalorder %s46_s30, %s1698_s5  ;;  %p1704_p12 = scmp.lt.s32.totalorder %s1698_s5, %s1698_s5 }
  0x21   :  { %p1705_p13 = por %p1704_p12, %p1703_p11 }
  0x23   :  { %p1706_p0 = pnand %p1705_p13, %p1699_p10 }
  0x25   :  { %1709 = shalt.err (!%p1706_p0)
}
  0x26   :  { %51 = dma.hbm_to_vmem [thread:$0]  %s1851_s3, 2304, %s46_s30, [#allocation8], %s1741_s0, %s1741_s0, %s1742_s23  }
  0x27   :  { %1732 = dma.done.wait [#allocation5], 2048  }
  0x28   :  { %1733 = vsyncadd [#allocation5], 4294965248 }
  0x29   :  { %1734 = dma.done.wait [#allocation8], 4608  }
  0x2a   :  { %1735 = vsyncadd [#allocation8], 4294962688  ;;  %s1420_s1 = sld [smem:[#allocation3 + $0x1]]  ;;  %v74_v0 = vld [vmem:[#allocation4 + $0x8] sm:$0xff]  ;;  %v73_v1 = vld [vmem:[#allocation4] sm:$0xff]  ;;  %vm75_vm0 = vcmask 130048  }
  0x2b   :  { %1523 = vmatprep.subr.mxu0 %v74_v0  ;;  %s1791_s8 = sld [smem:[#allocation3 + $0x3]]  ;;  %v242_v4 = vld [vmem:[#allocation4 + $0x18] sm:$0xff]  ;;  %v241_v5 = vld [vmem:[#allocation4 + $0x10] sm:$0xff]  ;;  %v404_v6 = vld [vmem:[#allocation4 + $0x28] sm:$0xff]  ;;  %s1744_s17 = smov [#allocation10]  }
  0x2c   :  { %1524 = vmatpush3.msra.mxu0 %v74_v0  ;;  %v403_v7 = vld [vmem:[#allocation4 + $0x20] sm:$0xff]  ;;  %v566_v8 = vld [vmem:[#allocation4 + $0x38] sm:$0xff]  ;;  %v565_v9 = vld [vmem:[#allocation4 + $0x30] sm:$0xff]  ;;  %s62_s11 = sld [smem:[#allocation3]]  ;;  %s1399_s18 = sshll.u32 %s1744_s17, 4  ;;  %s1400_s18 = int_to_ptr.vmem [resolvable:$true] %s1399_s18 }
  0x2d   :  { %1525 = vmatprep.subr.mxu0 %v73_v1  ;;  %v742_v10 = vld [vmem:[#allocation4 + $0x48] sm:$0xff]  ;;  %v741_v12 = vld [vmem:[#allocation4 + $0x40] sm:$0xff]  ;;  %v910_v14 = vld [vmem:[#allocation4 + $0x58] sm:$0xff]  ;;  %s1439_s14 = sld [smem:[#allocation3 + $0x2]]  ;;  %s1710_s19 = scalar_lea.vmem %s1400_s18, 2048 }
  0x2e   :  { %1526 = vmatpush3.msra.mxu0 %v73_v1  ;;  %v909_v15 = vld [vmem:[#allocation4 + $0x50] sm:$0xff]  ;;  %v1072_v16 = vld [vmem:[#allocation4 + $0x68] sm:$0xff]  ;;  %v1071_v17 = vld [vmem:[#allocation4 + $0x60] sm:$0xff]  ;;  %p1711_p1 = scmp.ne.s32.totalorder %s1400_s18, %s1710_s19  ;;  %p1715_p2 = scmp.lt.s32.totalorder %s1400_s18, %s1400_s18 }
  0x2f   :  { %1537 = vmatprep.subr.mxu0 %v242_v4  ;;  %v1234_v18 = vld [vmem:[#allocation4 + $0x78] sm:$0xff]  ;;  %v1233_v19 = vld [vmem:[#allocation4 + $0x70] sm:$0xff]  ;;  %p1716_p3 = scmp.lt.s32.totalorder %s1710_s19, %s1710_s19 }
  0x30   :  { %s1421_s7 = sshll.u32 %s1420_s1, 4 }
  0x31   :  { %s66_s9 = scalar_lea.vmem [#allocation7], %s1421_s7  ;;  %s1441_s3 = sshll.u32 %s1791_s8, 4 }
  0x32   :  { %v67_v2 = vld [vmem:[%s66_s9] sm:$0xff]  ;;  %v68_v3 = vld [vmem:[%s66_s9 + $0x8] sm:$0xff]  ;;  %s733_s10 = scalar_lea.vmem [#allocation7], %s1441_s3  ;;  %s1422_s12 = sshll.u32 %s62_s11, 4 }
  0x33   :  { %1527 = vmatprep.mubr.msk.f32.mxu0 %vm75_vm0, %v67_v2  ;;  %v734_v11 = vld [vmem:[%s733_s10] sm:$0xff]  ;;  %v735_v13 = vld [vmem:[%s733_s10 + $0x8] sm:$0xff]  ;;  %s70_s13 = scalar_lea.vmem [#allocation9], %s1422_s12  ;;  %s1442_s15 = sshll.u32 %s1439_s14, 4 }
  0x34   :  { %1528 = vmatmul.mubr.msk.f32.vlgmr.msra.gmra.mxu0 %vm75_vm0, %v68_v3  ;;  %v72_v20 = vld [vmem:[%s70_s13 + $0x8] sm:$0xff]  ;;  %v71_v21 = vld [vmem:[%s70_s13] sm:$0xff]  ;;  %s737_s16 = scalar_lea.vmem [#allocation9], %s1442_s15  ;;  %p1717_p4 = por %p1716_p3, %p1715_p2 }
  0x35   :  { %1538 = vmatpush3.msra.mxu0 %v242_v4  ;;  %1541 = vmatprep.mubr.msk.f32.mxu0 %vm75_vm0, %v67_v2  ;;  %v739_v29 = vld [vmem:[%s737_s16 + $0x8] sm:$0xff]  ;;  %v738_v31 = vld [vmem:[%s737_s16] sm:$0xff] }
  0x36   :  { %1539 = vmatprep.subr.mxu0 %v241_v5  ;;  %1530 = vmatprep.subr.mxu1 %v72_v20  ;;  %p1718_p5 = pnand %p1717_p4, %p1711_p1 }
  0x37   :  { %1540 = vmatpush3.msra.mxu0 %v241_v5  ;;  %1531 = vmatpush3.msra.mxu1 %v72_v20 }
  0x38   :  { %1542 = vmatmul.mubr.msk.f32.vlgmr.msra.gmra.mxu0 %vm75_vm0, %v68_v3  ;;  %1551 = vmatprep.subr.mxu0 %v404_v6 }
  0x39   :  { %1552 = vmatpush3.msra.mxu0 %v404_v6  ;;  %1555 = vmatprep.mubr.msk.f32.mxu0 %vm75_vm0, %v67_v2 }
  0x3a   :  { %1553 = vmatprep.subr.mxu0 %v403_v7  ;;  %1532 = vmatprep.subr.mxu1 %v71_v21 }
  0x3b   :  { %1554 = vmatpush3.msra.mxu0 %v403_v7  ;;  %1533 = vmatpush3.msra.mxu1 %v71_v21 }
  0x3c   :  { %1556 = vmatmul.mubr.msk.f32.vlgmr.msra.gmra.mxu0 %vm75_vm0, %v68_v3  ;;  %1565 = vmatprep.subr.mxu0 %v566_v8 }
  0x3d   :  { %1566 = vmatpush3.msra.mxu0 %v566_v8  ;;  %1569 = vmatprep.mubr.msk.f32.mxu0 %vm75_vm0, %v67_v2 }
  0x3e   :  { %1567 = vmatprep.subr.mxu0 %v565_v9  ;;  %1544 = vmatprep.subr.mxu1 %v72_v20 }
  0x3f   :  { %1568 = vmatpush3.msra.mxu0 %v565_v9 }
  0x40   :  { %1570 = vmatmul.mubr.msk.f32.vlgmr.msra.gmra.mxu0 %vm75_vm0, %v68_v3  ;;  %1579 = vmatprep.subr.mxu0 %v742_v10 }
  0x41   :  { %1580 = vmatpush3.msra.mxu0 %v742_v10  ;;  %1583 = vmatprep.mubr.msk.f32.mxu0 %vm75_vm0, %v734_v11 }
  0x42   :  { %1581 = vmatprep.subr.mxu0 %v741_v12 }
  0x43   :  { %1582 = vmatpush3.msra.mxu0 %v741_v12 }
  0x44   :  { %1584 = vmatmul.mubr.msk.f32.vlgmr.msra.gmra.mxu0 %vm75_vm0, %v735_v13  ;;  %1593 = vmatprep.subr.mxu0 %v910_v14 }
  0x45   :  { %1594 = vmatpush3.msra.mxu0 %v910_v14  ;;  %1597 = vmatprep.mubr.msk.f32.mxu0 %vm75_vm0, %v734_v11 }
  0x46   :  { %1595 = vmatprep.subr.mxu0 %v909_v15 }
  0x47   :  { %1596 = vmatpush3.msra.mxu0 %v909_v15 }
  0x48   :  { %1598 = vmatmul.mubr.msk.f32.vlgmr.msra.gmra.mxu0 %vm75_vm0, %v735_v13  ;;  %1607 = vmatprep.subr.mxu0 %v1072_v16 }
  0x49   :  { %1608 = vmatpush3.msra.mxu0 %v1072_v16  ;;  %1611 = vmatprep.mubr.msk.f32.mxu0 %vm75_vm0, %v734_v11 }
  0x4a   :  { %1609 = vmatprep.subr.mxu0 %v1071_v17 }
  0x4b   :  { %1610 = vmatpush3.msra.mxu0 %v1071_v17 }
  0x4c   :  { %1612 = vmatmul.mubr.msk.f32.vlgmr.msra.gmra.mxu0 %vm75_vm0, %v735_v13  ;;  %1621 = vmatprep.subr.mxu0 %v1234_v18 }
  0x4d   :  { %1622 = vmatpush3.msra.mxu0 %v1234_v18  ;;  %1625 = vmatprep.mubr.msk.f32.mxu0 %vm75_vm0, %v734_v11 }
  0x4e   :  { %1623 = vmatprep.subr.mxu0 %v1233_v19 }
  0x4f   :  { %1624 = vmatpush3.msra.mxu0 %v1233_v19 }
  0x50   :  { %1626 = vmatmul.mubr.msk.f32.vlgmr.msra.gmra.mxu0 %vm75_vm0, %v735_v13 }
  0xf4   :  { %v1529_v22 = vpop.f32.mrf.mxu0 }
  0xf6   :  { %v148_v23 = vpop.f32.mrf.mxu0 }
  0xf7   :  { %1534 = vmatprep.mubr.msk.f32.mxu1 %vm75_vm0, %v148_v23 }
  0xf8   :  { %1535 = vmatmul.mubr.msk.f32.vlgmr.msra.gmra.mxu1 %vm75_vm0, %v1529_v22  ;;  %v1543_v24 = vpop.f32.mrf.mxu0 }
  0xf9   :  { %1545 = vmatpush3.msra.mxu1 %v72_v20 }
  0xfa   :  { %v309_v25 = vpop.f32.mrf.mxu0  ;;  %1546 = vmatprep.subr.mxu1 %v71_v21 }
  0xfb   :  { %1547 = vmatpush3.msra.mxu1 %v71_v21  ;;  %1548 = vmatprep.mubr.msk.f32.mxu1 %vm75_vm0, %v309_v25 }
  0xfc   :  { %1549 = vmatmul.mubr.msk.f32.vlgmr.msra.gmra.mxu1 %vm75_vm0, %v1543_v24  ;;  %v1557_v26 = vpop.f32.mrf.mxu0  ;;  %1558 = vmatprep.subr.mxu1 %v72_v20 }
  0xfd   :  { %1559 = vmatpush3.msra.mxu1 %v72_v20 }
  0xfe   :  { %v471_v27 = vpop.f32.mrf.mxu0  ;;  %1560 = vmatprep.subr.mxu1 %v71_v21 }
  0xff   :  { %1561 = vmatpush3.msra.mxu1 %v71_v21  ;;  %1562 = vmatprep.mubr.msk.f32.mxu1 %vm75_vm0, %v471_v27 }
 0x100   :  { %1563 = vmatmul.mubr.msk.f32.vlgmr.msra.gmra.mxu1 %vm75_vm0, %v1557_v26  ;;  %v1571_v28 = vpop.f32.mrf.mxu0  ;;  %1572 = vmatprep.subr.mxu1 %v72_v20 }
 0x101   :  { %1573 = vmatpush3.msra.mxu1 %v72_v20 }
 0x102   :  { %v633_v30 = vpop.f32.mrf.mxu0  ;;  %1574 = vmatprep.subr.mxu1 %v71_v21 }
 0x103   :  { %1575 = vmatpush3.msra.mxu1 %v71_v21  ;;  %1576 = vmatprep.mubr.msk.f32.mxu1 %vm75_vm0, %v633_v30 }
 0x104   :  { %1577 = vmatmul.mubr.msk.f32.vlgmr.msra.gmra.mxu1 %vm75_vm0, %v1571_v28  ;;  %v1585_v32 = vpop.f32.mrf.mxu0  ;;  %1586 = vmatprep.subr.mxu1 %v739_v29 }
 0x105   :  { %1587 = vmatpush3.msra.mxu1 %v739_v29 }
 0x106   :  { %v815_v33 = vpop.f32.mrf.mxu0  ;;  %1588 = vmatprep.subr.mxu1 %v738_v31 }
 0x107   :  { %1589 = vmatpush3.msra.mxu1 %v738_v31  ;;  %1590 = vmatprep.mubr.msk.f32.mxu1 %vm75_vm0, %v815_v33 }
 0x108   :  { %1591 = vmatmul.mubr.msk.f32.vlgmr.msra.gmra.mxu1 %vm75_vm0, %v1585_v32  ;;  %v1599_v34 = vpop.f32.mrf.mxu0  ;;  %1600 = vmatprep.subr.mxu1 %v739_v29 }
 0x109   :  { %1601 = vmatpush3.msra.mxu1 %v739_v29 }
 0x10a   :  { %v977_v35 = vpop.f32.mrf.mxu0  ;;  %1602 = vmatprep.subr.mxu1 %v738_v31 }
 0x10b   :  { %1603 = vmatpush3.msra.mxu1 %v738_v31  ;;  %1604 = vmatprep.mubr.msk.f32.mxu1 %vm75_vm0, %v977_v35 }
 0x10c   :  { %1605 = vmatmul.mubr.msk.f32.vlgmr.msra.gmra.mxu1 %vm75_vm0, %v1599_v34  ;;  %v1613_v36 = vpop.f32.mrf.mxu0  ;;  %1614 = vmatprep.subr.mxu1 %v739_v29 }
 0x10d   :  { %1615 = vmatpush3.msra.mxu1 %v739_v29 }
 0x10e   :  { %v1139_v37 = vpop.f32.mrf.mxu0  ;;  %1616 = vmatprep.subr.mxu1 %v738_v31 }
 0x10f   :  { %1617 = vmatpush3.msra.mxu1 %v738_v31  ;;  %1618 = vmatprep.mubr.msk.f32.mxu1 %vm75_vm0, %v1139_v37 }
 0x110   :  { %1619 = vmatmul.mubr.msk.f32.vlgmr.msra.gmra.mxu1 %vm75_vm0, %v1613_v36  ;;  %v1627_v38 = vpop.f32.mrf.mxu0  ;;  %1628 = vmatprep.subr.mxu1 %v739_v29 }
 0x111   :  { %1629 = vmatpush3.msra.mxu1 %v739_v29 }
 0x112   :  { %v1301_v39 = vpop.f32.mrf.mxu0  ;;  %1630 = vmatprep.subr.mxu1 %v738_v31 }
 0x113   :  { %1631 = vmatpush3.msra.mxu1 %v738_v31  ;;  %1632 = vmatprep.mubr.msk.f32.mxu1 %vm75_vm0, %v1301_v39 }
 0x114   :  { %1633 = vmatmul.mubr.msk.f32.vlgmr.msra.gmra.mxu1 %vm75_vm0, %v1627_v38 }
 0x1b8   :  { %v1536_v40 = vpop.f32.mrf.mxu1 }
 0x1b9   :  { %239 = vst.msk [vmem:[#allocation10 + $0x8] sm:$0xff] %vm75_vm0, %v1536_v40 }
 0x1ba   :  { %v229_v41 = vpop.f32.mrf.mxu1 }
 0x1bb   :  { %238 = vst.msk [vmem:[#allocation10] sm:$0xff] %vm75_vm0, %v229_v41 }
 0x1bc   :  { %v1550_v42 = vpop.f32.mrf.mxu1 }
 0x1bd   :  { %401 = vst.msk [vmem:[#allocation10 + $0x18] sm:$0xff] %vm75_vm0, %v1550_v42 }
 0x1be   :  { %v390_v43 = vpop.f32.mrf.mxu1 }
 0x1bf   :  { %400 = vst.msk [vmem:[#allocation10 + $0x10] sm:$0xff] %vm75_vm0, %v390_v43 }
 0x1c0   :  { %v1564_v44 = vpop.f32.mrf.mxu1 }
 0x1c1   :  { %563 = vst.msk [vmem:[#allocation10 + $0x28] sm:$0xff] %vm75_vm0, %v1564_v44 }
 0x1c2   :  { %v552_v45 = vpop.f32.mrf.mxu1 }
 0x1c3   :  { %562 = vst.msk [vmem:[#allocation10 + $0x20] sm:$0xff] %vm75_vm0, %v552_v45 }
 0x1c4   :  { %v1578_v46 = vpop.f32.mrf.mxu1 }
 0x1c5   :  { %725 = vst.msk [vmem:[#allocation10 + $0x38] sm:$0xff] %vm75_vm0, %v1578_v46 }
 0x1c6   :  { %v714_v47 = vpop.f32.mrf.mxu1 }
 0x1c7   :  { %724 = vst.msk [vmem:[#allocation10 + $0x30] sm:$0xff] %vm75_vm0, %v714_v47 }
 0x1c8   :  { %v1592_v48 = vpop.f32.mrf.mxu1 }
 0x1c9   :  { %907 = vst.msk [vmem:[#allocation10 + $0x48] sm:$0xff] %vm75_vm0, %v1592_v48 }
 0x1ca   :  { %v896_v49 = vpop.f32.mrf.mxu1 }
 0x1cb   :  { %906 = vst.msk [vmem:[#allocation10 + $0x40] sm:$0xff] %vm75_vm0, %v896_v49 }
 0x1cc   :  { %v1606_v50 = vpop.f32.mrf.mxu1 }
 0x1cd   :  { %1069 = vst.msk [vmem:[#allocation10 + $0x58] sm:$0xff] %vm75_vm0, %v1606_v50 }
 0x1ce   :  { %v1058_v51 = vpop.f32.mrf.mxu1 }
 0x1cf   :  { %1068 = vst.msk [vmem:[#allocation10 + $0x50] sm:$0xff] %vm75_vm0, %v1058_v51 }
 0x1d0   :  { %v1620_v52 = vpop.f32.mrf.mxu1 }
 0x1d1   :  { %1231 = vst.msk [vmem:[#allocation10 + $0x68] sm:$0xff] %vm75_vm0, %v1620_v52 }
 0x1d2   :  { %v1220_v53 = vpop.f32.mrf.mxu1 }
 0x1d3   :  { %1230 = vst.msk [vmem:[#allocation10 + $0x60] sm:$0xff] %vm75_vm0, %v1220_v53 }
 0x1d4   :  { %v1634_v54 = vpop.f32.mrf.mxu1 }
 0x1d5   :  { %1393 = vst.msk [vmem:[#allocation10 + $0x78] sm:$0xff] %vm75_vm0, %v1634_v54 }
 0x1d6   :  { %v1382_v55 = vpop.f32.mrf.mxu1 }
 0x1d7   :  { %1392 = vst.msk [vmem:[#allocation10 + $0x70] sm:$0xff] %vm75_vm0, %v1382_v55 }
 0x1d8   :  { %1721 = shalt.err (!%p1718_p5)
}
 0x1d9   :  { %1405 = dma.vmem_to_hbm [thread:$0]  %s1400_s18, 2048, %s1852_s4, [#allocation6], %s1741_s0, %s1741_s0, %s1742_s23  }
 0x1da   :  { %1736 = dma.done.wait [#allocation6], 2048  }
 0x1db   :  { %1737 = vsyncadd [#allocation6], 4294965248 }
 0x1dc   :  { %1409 = vsyncpa [#allocation5], 1 }
 0x1dd   :  { %1410 = vsyncpa [#allocation8], 1 }
 0x1de   :  { %1411 = vsyncpa [#allocation6], 1 }

</bundles_post_ra>
